<compile_context>
chip_gen: v5e
topology: v5e:2x2
jax: 0.10.0
libtpu: 0.0.40
codegen_flags: <defaults>
</compile_context>

<pallas_src>
import functools

import jax
import jax.numpy as jnp
from jax import lax
from jax.experimental import pallas as pl
from jax.experimental.pallas import tpu as pltpu


def _residual_block_kernel(x_ref, w1_ref, b1_ref, w2_ref, b2_ref,
                           o_ref, xstack_ref, hstack_ref,
                           *, kernel_size, dilation, c_mid,
                           relu_after_conv2, has_conv3):
    # Shapes (channels on sublanes, time on lanes):
    #   x_ref:  (1, C_in, pad + L)         causally pre-padded input block
    #   w1_ref: (C_mid [+ C_out], K*C_in)  fused conv1 weight (+ folded 1x1 residual)
    #   b1_ref: (C_mid [+ C_out], 1)
    #   w2_ref: (C_out, K*C_mid)           fused conv2 weight
    #   b2_ref: (C_out, 1)
    #   o_ref:  (1, C_out, L)
    K = kernel_size
    d = dilation
    pad = d * (K - 1)
    L = o_ref.shape[2]
    c_in = x_ref.shape[1]

    x = x_ref[0]                                      # (C_in, pad + L), model dtype

    # ---- im2col for conv1: stack the K dilated shifts along the contraction axis ----
    for k in range(K):
        xstack_ref[k * c_in:(k + 1) * c_in, :] = x[:, k * d:k * d + L]

    # ---- conv1 (+ folded 1x1 residual conv) as ONE MXU call ----
    acc1 = jnp.dot(w1_ref[...], xstack_ref[...],
                   preferred_element_type=jnp.float32) + b1_ref[...]
    pre1 = acc1[:c_mid]                               # conv1 pre-activation (C_mid, L)
    if has_conv3:
        res = acc1[c_mid:]                            # residual = w3 @ x + b3  (C_out, L)
    else:
        res = x[:, pad:].astype(jnp.float32)          # identity residual (C_in == C_out)

    h = jnp.maximum(pre1, 0.0).astype(hstack_ref.dtype)
    # TODO(synk): dropout_fn is treated as identity (inference / eval mode).

    # ---- im2col for conv2: tap k sees h shifted right by (K-1-k)*d with zero fill ----
    for k in range(K):
        shift = (K - 1 - k) * d
        r0 = k * c_mid
        if shift == 0:
            hstack_ref[r0:r0 + c_mid, :] = h
        elif shift < L:
            hstack_ref[r0:r0 + c_mid, :shift] = jnp.zeros((c_mid, shift), hstack_ref.dtype)
            hstack_ref[r0:r0 + c_mid, shift:] = h[:, :L - shift]
        else:
            hstack_ref[r0:r0 + c_mid, :] = jnp.zeros((c_mid, L), hstack_ref.dtype)

    # ---- conv2 as ONE MXU call ----
    acc2 = jnp.dot(w2_ref[...], hstack_ref[...],
                   preferred_element_type=jnp.float32) + b2_ref[...]
    if relu_after_conv2:
        acc2 = jnp.maximum(acc2, 0.0)

    o_ref[0] = (acc2 + res).astype(o_ref.dtype)


def residual_block_forward(x_ncl, params, *, kernel_size, dilation, relu_after_conv2):
    """x_ncl: (B, C_in, L) PyTorch NCW layout.  Returns (B, C_out, L) in the same layout."""
    B, c_in, L = x_ncl.shape
    has_conv3 = "w3" in params
    K = kernel_size
    pad = dilation * (K - 1)
    dtype = x_ncl.dtype

    # PyTorch Conv1d weight (out, in, K) -> fused (out, K*in), with
    # fused[o, k*in + i] = w[o, i, k] to match the tap-stacked im2col built in-kernel.
    w1 = params["w1"].astype(dtype)
    w2 = params["w2"].astype(dtype)
    c_mid = w1.shape[0]
    c_out = w2.shape[0]
    w1f = jnp.transpose(w1, (0, 2, 1)).reshape(c_mid, K * c_in)
    w2f = jnp.transpose(w2, (0, 2, 1)).reshape(c_out, K * c_mid)
    b1 = params["b1"].astype(dtype).reshape(c_mid, 1)
    b2 = params["b2"].astype(dtype).reshape(c_out, 1)

    if has_conv3:
        # Fold the 1x1 residual conv into the conv1 matmul: its LHS (x) equals the
        # last (unshifted) tap of the conv1 im2col, so append C_out extra output rows
        # whose weights are zero for every tap except the last one.
        w3 = params["w3"].astype(dtype)[:, :, 0]                      # (C_out, C_in)
        w3_ext = jnp.concatenate(
            [jnp.zeros((c_out, (K - 1) * c_in), dtype), w3], axis=1)  # (C_out, K*C_in)
        w1cat = jnp.concatenate([w1f, w3_ext], axis=0)                # (C_mid+C_out, K*C_in)
        b1cat = jnp.concatenate(
            [b1, params["b3"].astype(dtype).reshape(c_out, 1)], axis=0)
    else:
        assert c_in == c_out, "identity residual requires matching channel counts"
        w1cat, b1cat = w1f, b1
    c1rows = w1cat.shape[0]

    # Causal left-pad once in HBM: removes the per-step zero + copy of a padded scratch.
    x_pad = jnp.pad(x_ncl, ((0, 0), (0, 0), (pad, 0)))                # (B, C_in, pad+L)

    kernel = functools.partial(
        _residual_block_kernel,
        kernel_size=K, dilation=dilation, c_mid=c_mid,
        relu_after_conv2=relu_after_conv2, has_conv3=has_conv3)

    flops = 2 * B * L * (K * c_in * c1rows + K * c_mid * c_out)
    bytes_accessed = (x_pad.size + w1cat.size + b1cat.size + w2f.size + b2.size
                      + B * c_out * L) * x_pad.dtype.itemsize
    cost = pl.CostEstimate(flops=flops, transcendentals=0,
                           bytes_accessed=bytes_accessed)

    y = pl.pallas_call(
        kernel,
        out_shape=jax.ShapeDtypeStruct((B, c_out, L), dtype),
        grid_spec=pltpu.PrefetchScalarGridSpec(
            num_scalar_prefetch=0,
            grid=(B,),
            in_specs=[
                pl.BlockSpec((1, c_in, pad + L), lambda b: (b, 0, 0)),
                pl.BlockSpec((c1rows, K * c_in), lambda b: (0, 0)),
                pl.BlockSpec((c1rows, 1), lambda b: (0, 0)),
                pl.BlockSpec((c_out, K * c_mid), lambda b: (0, 0)),
                pl.BlockSpec((c_out, 1), lambda b: (0, 0)),
            ],
            out_specs=pl.BlockSpec((1, c_out, L), lambda b: (b, 0, 0)),
            scratch_shapes=[
                pltpu.VMEM((K * c_in, L), dtype),    # conv1 im2col (tap-stacked x)
                pltpu.VMEM((K * c_mid, L), dtype),   # conv2 im2col (tap-stacked h)
            ],
        ),
        compiler_params=pltpu.CompilerParams(dimension_semantics=("parallel",)),
        cost_estimate=cost,
    )(x_pad, w1cat, b1cat, w2f, b2)

    return y


# ------------------------- pure-JAX reference (for checking) -------------------------
def _ref_causal_conv1d(x, w, b, dilation, left_pad):
    xp = jnp.pad(x, ((0, 0), (0, 0), (left_pad, 0)))
    y = lax.conv_general_dilated(xp, w, window_strides=(1,), padding="VALID",
                                 rhs_dilation=(dilation,),
                                 dimension_numbers=("NCH", "OIH", "NCH"))
    return y + b[None, :, None]


def reference_forward(x, params, kernel_size, dilation, relu_after_conv2):
    pad = dilation * (kernel_size - 1)
    residual = x
    h = jax.nn.relu(_ref_causal_conv1d(x, params["w1"], params["b1"], dilation, pad))
    y = _ref_causal_conv1d(h, params["w2"], params["b2"], dilation, pad)
    if relu_after_conv2:
        y = jax.nn.relu(y)
    if "w3" in params:
        residual = _ref_causal_conv1d(x, params["w3"], params["b3"], 1, 0)
    return y + residual


if __name__ == "__main__":
    # Module config (second block of a 2-layer TCN): dilation = 2**1 = 2,
    # input_dim = num_filters = 8, output_dim = target_size = 4 -> conv3 is present,
    # no ReLU after conv2 (nr_blocks_below == num_layers - 1).
    num_filters, kernel_size, dilation_base = 8, 3, 2
    nr_blocks_below, num_layers = 1, 2
    input_size, target_size = 4, 4
    B, L = 2, 16

    input_dim = input_size if nr_blocks_below == 0 else num_filters
    output_dim = target_size if nr_blocks_below == num_layers - 1 else num_filters
    dilation = dilation_base ** nr_blocks_below
    relu_after_conv2 = nr_blocks_below < num_layers - 1

    keys = jax.random.split(jax.random.PRNGKey(0), 8)
    x = jax.random.normal(keys[0], (B, input_dim, L), jnp.float32)
    params = {
        "w1": 0.2 * jax.random.normal(keys[1], (num_filters, input_dim, kernel_size), jnp.float32),
        "b1": 0.1 * jax.random.normal(keys[2], (num_filters,), jnp.float32),
        "w2": 0.2 * jax.random.normal(keys[3], (output_dim, num_filters, kernel_size), jnp.float32),
        "b2": 0.1 * jax.random.normal(keys[4], (output_dim,), jnp.float32),
    }
    if input_dim != output_dim:
        params["w3"] = 0.2 * jax.random.normal(keys[5], (output_dim, input_dim, 1), jnp.float32)
        params["b3"] = 0.1 * jax.random.normal(keys[6], (output_dim,), jnp.float32)

    y = residual_block_forward(x, params, kernel_size=kernel_size,
                               dilation=dilation, relu_after_conv2=relu_after_conv2)
    jax.block_until_ready(y)

    y_ref = reference_forward(x, params, kernel_size, dilation, relu_after_conv2)
    assert y.shape == (B, output_dim, L), y.shape
    assert jnp.allclose(y, y_ref, atol=1e-4, rtol=1e-4), float(jnp.max(jnp.abs(y - y_ref)))
    print("KERNEL_OK")
</pallas_src>

<mosaic_0001>
module attributes {stable_mosaic.version = 11 : i64} {
  func.func @_residual_block_kernel(%arg0: i32, %arg1: memref<1x8x20xf32, #tpu.memory_space<vmem>>, %arg2: memref<12x24xf32, #tpu.memory_space<vmem>>, %arg3: memref<12x1xf32, #tpu.memory_space<vmem>>, %arg4: memref<4x24xf32, #tpu.memory_space<vmem>>, %arg5: memref<4x1xf32, #tpu.memory_space<vmem>>, %arg6: memref<1x4x16xf32, #tpu.memory_space<vmem>>, %arg7: memref<24x16xf32, #tpu.memory_space<vmem>>, %arg8: memref<24x16xf32, #tpu.memory_space<vmem>>) attributes {dimension_semantics = [#tpu.dimension_semantics<parallel>], iteration_bounds = array<i64: 2>, scalar_prefetch = 0 : i64, scratch_operands = 2 : i64, tpu.core_type = #tpu.core_type<tc>, window_params = [{transform_indices = @transform_0, window_bounds = array<i64: 1, 8, 20>}, {pipeline_mode = #tpu.pipeline_mode<synchronous>, transform_indices = @transform_1, window_bounds = array<i64: 12, 24>}, {pipeline_mode = #tpu.pipeline_mode<synchronous>, transform_indices = @transform_2, window_bounds = array<i64: 12, 1>}, {pipeline_mode = #tpu.pipeline_mode<synchronous>, transform_indices = @transform_3, window_bounds = array<i64: 4, 24>}, {pipeline_mode = #tpu.pipeline_mode<synchronous>, transform_indices = @transform_4, window_bounds = array<i64: 4, 1>}, {transform_indices = @transform_5, window_bounds = array<i64: 1, 4, 16>}]} {
    %c0 = arith.constant 0 : index
    %c0_0 = arith.constant 0 : index
    %c0_1 = arith.constant 0 : index
    %0 = vector.load %arg1[%c0, %c0_0, %c0_1] : memref<1x8x20xf32, #tpu.memory_space<vmem>>, vector<1x8x20xf32>
    %1 = vector.shape_cast %0 : vector<1x8x20xf32> to vector<8x20xf32>
    %2 = vector.extract_strided_slice %1 {offsets = [0, 0], sizes = [8, 16], strides = [1, 1]} : vector<8x20xf32> to vector<8x16xf32>
    %c0_2 = arith.constant 0 : index
    %c0_3 = arith.constant 0 : index
    %3 = vector.load %arg7[%c0_2, %c0_3] : memref<24x16xf32, #tpu.memory_space<vmem>>, vector<8x16xf32>
    tpu.vector_store %arg7[%c0_2, %c0_3], %2 {strides = array<i32>} : memref<24x16xf32, #tpu.memory_space<vmem>>, vector<8x16xf32>,
    %4 = vector.extract_strided_slice %1 {offsets = [0, 2], sizes = [8, 16], strides = [1, 1]} : vector<8x20xf32> to vector<8x16xf32>
    %c8 = arith.constant 8 : index
    %c0_4 = arith.constant 0 : index
    %5 = vector.load %arg7[%c8, %c0_4] : memref<24x16xf32, #tpu.memory_space<vmem>>, vector<8x16xf32>
    tpu.vector_store %arg7[%c8, %c0_4], %4 {strides = array<i32>} : memref<24x16xf32, #tpu.memory_space<vmem>>, vector<8x16xf32>,
    %6 = vector.extract_strided_slice %1 {offsets = [0, 4], sizes = [8, 16], strides = [1, 1]} : vector<8x20xf32> to vector<8x16xf32>
    %c16 = arith.constant 16 : index
    %c0_5 = arith.constant 0 : index
    %7 = vector.load %arg7[%c16, %c0_5] : memref<24x16xf32, #tpu.memory_space<vmem>>, vector<8x16xf32>
    tpu.vector_store %arg7[%c16, %c0_5], %6 {strides = array<i32>} : memref<24x16xf32, #tpu.memory_space<vmem>>, vector<8x16xf32>,
    %c0_6 = arith.constant 0 : index
    %c0_7 = arith.constant 0 : index
    %8 = vector.load %arg2[%c0_6, %c0_7] : memref<12x24xf32, #tpu.memory_space<vmem>>, vector<12x24xf32>
    %c0_8 = arith.constant 0 : index
    %c0_9 = arith.constant 0 : index
    %9 = vector.load %arg7[%c0_8, %c0_9] : memref<24x16xf32, #tpu.memory_space<vmem>>, vector<24x16xf32>
    %cst = arith.constant dense<0.000000e+00> : vector<12x16xf32>
    %10 = tpu.matmul %8, %9, %cst {dimension_numbers = #tpu.dot_dimension_numbers<[1], [0], [0], [1], [0, 0, 1, 1], [], []>} : vector<12x24xf32>, vector<24x16xf32>, vector<12x16xf32> -> vector<12x16xf32>
    %c0_10 = arith.constant 0 : index
    %c0_11 = arith.constant 0 : index
    %11 = vector.load %arg3[%c0_10, %c0_11] : memref<12x1xf32, #tpu.memory_space<vmem>>, vector<12x1xf32>
    %12 = vector.broadcast %11 : vector<12x1xf32> to vector<12x16xf32>
    %13 = arith.addf %10, %12 : vector<12x16xf32>
    %14 = vector.extract_strided_slice %13 {offsets = [0, 0], sizes = [8, 16], strides = [1, 1]} : vector<12x16xf32> to vector<8x16xf32>
    %15 = vector.extract_strided_slice %13 {offsets = [8, 0], sizes = [4, 16], strides = [1, 1]} : vector<12x16xf32> to vector<4x16xf32>
    %cst_12 = arith.constant 0.000000e+00 : f32
    %16 = vector.broadcast %cst_12 : f32 to vector<8x16xf32>
    %17 = arith.maximumf %14, %16 : vector<8x16xf32>
    %cst_13 = arith.constant 0.000000e+00 : f32
    %18 = vector.broadcast %cst_13 : f32 to vector<8x4xf32>
    %c0_14 = arith.constant 0 : index
    %c0_15 = arith.constant 0 : index
    %19 = vector.load %arg8[%c0_14, %c0_15] : memref<24x16xf32, #tpu.memory_space<vmem>>, vector<8x4xf32>
    tpu.vector_store %arg8[%c0_14, %c0_15], %18 {strides = array<i32>} : memref<24x16xf32, #tpu.memory_space<vmem>>, vector<8x4xf32>,
    %20 = vector.extract_strided_slice %17 {offsets = [0, 0], sizes = [8, 12], strides = [1, 1]} : vector<8x16xf32> to vector<8x12xf32>
    %c0_16 = arith.constant 0 : index
    %c4 = arith.constant 4 : index
    %21 = vector.load %arg8[%c0_16, %c4] : memref<24x16xf32, #tpu.memory_space<vmem>>, vector<8x12xf32>
    tpu.vector_store %arg8[%c0_16, %c4], %20 {strides = array<i32>} : memref<24x16xf32, #tpu.memory_space<vmem>>, vector<8x12xf32>,
    %cst_17 = arith.constant 0.000000e+00 : f32
    %22 = vector.broadcast %cst_17 : f32 to vector<8x2xf32>
    %c8_18 = arith.constant 8 : index
    %c0_19 = arith.constant 0 : index
    %23 = vector.load %arg8[%c8_18, %c0_19] : memref<24x16xf32, #tpu.memory_space<vmem>>, vector<8x2xf32>
    tpu.vector_store %arg8[%c8_18, %c0_19], %22 {strides = array<i32>} : memref<24x16xf32, #tpu.memory_space<vmem>>, vector<8x2xf32>,
    %24 = vector.extract_strided_slice %17 {offsets = [0, 0], sizes = [8, 14], strides = [1, 1]} : vector<8x16xf32> to vector<8x14xf32>
    %c8_20 = arith.constant 8 : index
    %c2 = arith.constant 2 : index
    %25 = vector.load %arg8[%c8_20, %c2] : memref<24x16xf32, #tpu.memory_space<vmem>>, vector<8x14xf32>
    tpu.vector_store %arg8[%c8_20, %c2], %24 {strides = array<i32>} : memref<24x16xf32, #tpu.memory_space<vmem>>, vector<8x14xf32>,
    %c16_21 = arith.constant 16 : index
    %c0_22 = arith.constant 0 : index
    %26 = vector.load %arg8[%c16_21, %c0_22] : memref<24x16xf32, #tpu.memory_space<vmem>>, vector<8x16xf32>
    tpu.vector_store %arg8[%c16_21, %c0_22], %17 {strides = array<i32>} : memref<24x16xf32, #tpu.memory_space<vmem>>, vector<8x16xf32>,
    %c0_23 = arith.constant 0 : index
    %c0_24 = arith.constant 0 : index
    %27 = vector.load %arg4[%c0_23, %c0_24] : memref<4x24xf32, #tpu.memory_space<vmem>>, vector<4x24xf32>
    %c0_25 = arith.constant 0 : index
    %c0_26 = arith.constant 0 : index
    %28 = vector.load %arg8[%c0_25, %c0_26] : memref<24x16xf32, #tpu.memory_space<vmem>>, vector<24x16xf32>
    %cst_27 = arith.constant dense<0.000000e+00> : vector<4x16xf32>
    %29 = tpu.matmul %27, %28, %cst_27 {dimension_numbers = #tpu.dot_dimension_numbers<[1], [0], [0], [1], [0, 0, 1, 1], [], []>} : vector<4x24xf32>, vector<24x16xf32>, vector<4x16xf32> -> vector<4x16xf32>
    %c0_28 = arith.constant 0 : index
    %c0_29 = arith.constant 0 : index
    %30 = vector.load %arg5[%c0_28, %c0_29] : memref<4x1xf32, #tpu.memory_space<vmem>>, vector<4x1xf32>
    %31 = vector.broadcast %30 : vector<4x1xf32> to vector<4x16xf32>
    %32 = arith.addf %29, %31 : vector<4x16xf32>
    %33 = arith.addf %32, %15 : vector<4x16xf32>
    %c0_30 = arith.constant 0 : index
    %c0_31 = arith.constant 0 : index
    %c0_32 = arith.constant 0 : index
    %34 = vector.load %arg6[%c0_30, %c0_31, %c0_32] : memref<1x4x16xf32, #tpu.memory_space<vmem>>, vector<1x4x16xf32>
    %35 = vector.shape_cast %34 : vector<1x4x16xf32> to vector<4x16xf32>
    %36 = vector.shape_cast %33 : vector<4x16xf32> to vector<1x4x16xf32>
    tpu.vector_store %arg6[%c0_30, %c0_31, %c0_32], %36 {strides = array<i32>} : memref<1x4x16xf32, #tpu.memory_space<vmem>>, vector<1x4x16xf32>,
    return
  }
  func.func @transform_0(%arg0: i32) -> (i32, i32, i32) {
    %c0_i32 = arith.constant 0 : i32
    %c0_i32_0 = arith.constant 0 : i32
    %c0_i32_1 = arith.constant 0 : i32
    return %arg0, %c0_i32, %c0_i32_0 : i32, i32, i32
  }
  func.func @transform_1(%arg0: i32) -> (i32, i32) {
    %c0_i32 = arith.constant 0 : i32
    %c0_i32_0 = arith.constant 0 : i32
    %c0_i32_1 = arith.constant 0 : i32
    return %c0_i32, %c0_i32_0 : i32, i32
  }
  func.func @transform_2(%arg0: i32) -> (i32, i32) {
    %c0_i32 = arith.constant 0 : i32
    %c0_i32_0 = arith.constant 0 : i32
    %c0_i32_1 = arith.constant 0 : i32
    return %c0_i32, %c0_i32_0 : i32, i32
  }
  func.func @transform_3(%arg0: i32) -> (i32, i32) {
    %c0_i32 = arith.constant 0 : i32
    %c0_i32_0 = arith.constant 0 : i32
    %c0_i32_1 = arith.constant 0 : i32
    return %c0_i32, %c0_i32_0 : i32, i32
  }
  func.func @transform_4(%arg0: i32) -> (i32, i32) {
    %c0_i32 = arith.constant 0 : i32
    %c0_i32_0 = arith.constant 0 : i32
    %c0_i32_1 = arith.constant 0 : i32
    return %c0_i32, %c0_i32_0 : i32, i32
  }
  func.func @transform_5(%arg0: i32) -> (i32, i32, i32) {
    %c0_i32 = arith.constant 0 : i32
    %c0_i32_0 = arith.constant 0 : i32
    %c0_i32_1 = arith.constant 0 : i32
    return %arg0, %c0_i32, %c0_i32_0 : i32, i32, i32
  }
}

</mosaic_0001>

<bundles_post_ra>
// kernel: tpu_custom_call.1
= control target key start
LH: loop header
LB: loop body
LE: loop exit
PB: predicated region body
PF: predicated region fallthrough
CT: control target
= control target key end

     0   :  { %10 = vsyncpa [#allocation5], 0  ;;  %s766_s0 = inlined_call_operand.vmem [shape: f32[2,8,20], index: 0, kind: input, shape index: {}]   ;;  %s767_s1 = inlined_call_operand.hbm [shape: f32[12,24], index: 1, kind: input, shape index: {}]   ;;  %s768_s2 = inlined_call_operand.vmem [shape: f32[12,1], index: 2, kind: input, shape index: {}]   ;;  %s769_s3 = inlined_call_operand.vmem [shape: f32[4,24], index: 3, kind: input, shape index: {}]   ;;  %s770_s4 = inlined_call_operand.vmem [shape: f32[4,1], index: 4, kind: input, shape index: {}]   ;;  %s771_s5 = inlined_call_operand.hbm [shape: f32[2,4,16], index: 5, kind: output, shape index: {}]  }
   0x1   :  { %11 = vsyncpa [#allocation6], 0 }
   0x2   :  { %13 = vsyncpa [#allocation6 + $0x1], 0  ;;  %s652_s18 = smov 0   ;;  %s654_s19 = smov 0  }
   0x3   :  { %s656_s20 = smov 0   ;;  %s658_s21 = smov 0  }
   0x4 LB: > { %s673_s22 = sadd.s32 4294967295, %s611_s21   ;;  %s436_s23 = sadd.s32 4294967294, %s611_s21   ;;  %s611_s21 = sphi %s658_s21, %s777_s21   ;;  %s607_s20 = sphi %s656_s20, %s776_s20   ;;  %s603_s19 = sphi %s654_s19, %s775_s19   ;;  %s599_s18 = sphi %s652_s18, %s774_s18  }
   0x5   : > { %s677_s24 = sadd.s32 1, %s611_s21   ;;  %s136_s25 = sadd.s32 1, %s607_s20 }
   0x6   : > { %s133_s26 = ssub.s32 %s611_s21, %s677_s24  ;;  %p146_p0 = scmp.ne.s32.totalorder %s607_s20, %s603_s19 }
   0x7   : > { %p134_p1 = scmp.eq.s32.totalorder %s133_s26, 0  ;;  %p147_p2 = scmp.eq.s32.totalorder %s673_s22, 1 }
   0x8   : > { %p152_p3 = scmp.ne.s32.totalorder %s603_s19, %s599_s18  ;;  %p153_p4 = scmp.eq.s32.totalorder %s436_s23, 1 }
   0x9   : > { %s688_s27 = scalar_select %p134_p1, %s607_s20, %s136_s25  }
   0xa   : > { %p690_p5 = por %p147_p2, %p146_p0  ;;  %p694_p6 = por %p153_p4, %p152_p3 }
   0xb   : > { %p437_p7 = scmp.ge.s32.totalorder %s611_s21, 1  ;;  %p160_p8 = scmp.lt.s32.totalorder %s611_s21, 3 }
   0xc   : > { %p468_p9 = scmp.eq.s32.totalorder %s673_s22, 0  ;;  %s171_s7 = sshll.u32 %s767_s1, 4  ;;  %s172_s7 = int_to_ptr.hbm [resolvable:$true] %s171_s7 }
   0xd   : > { %p161_p10 = pnand %p437_p7, %p160_p8  ;;  %s613_s8 = smov [#allocation4]  }
   0xe   : > { %s173_s9 = sshll.u32 %s613_s8, 4  ;;  %s614_s10 = smov 128   ;;  %s174_s9 = int_to_ptr.vmem [resolvable:$true] %s173_s9 }
   0xf   : > { %p460_p11 = pneg %p161_p10  ;;  %s615_s11 = smov 8  }
  0x10   : > { %205 = sbr.rel (%p161_p10) target bundleno = 552 (0x228), region = 40 }
  0x11   : > { %p461_p12 = pnand %p468_p9, %p460_p11 }
  0x13   : > { %463 = dma.hbm_to_vmem [thread:$0]  (!%p461_p12), %s172_s7, 256, %s174_s9, [#allocation5], %s614_s10, %s614_s10, %s615_s11  }
  0x15   : > { %590 = dma.done.wait (%p468_p9), [#allocation5], 256  }
  0x16   : > { %592 = vsyncadd (%p468_p9), [#allocation5], 4294967040  ;;  %p233_p13 = scmp.lt.s32.totalorder %s673_s22, 1  ;;  %vm238_vm0 = vcmask 130048   ;;  %s616_s17 = smov 124   ;;  %v254_v1 = vld [vmem:[%s768_s2] sm:$0xff] }
  0x17   : > { %s617_s23 = smov 126   ;;  %v618_v2 = vmov 0   ;;  %v249_v8 = vld [vmem:[#allocation4] sm:$0xff]  ;;  %vm266_vm1 = vcmask 195584   ;;  %vm297_vm2 = vcmask 31744   ;;  %v619_v9 = vmov 0.0  }
  0x18   : > { %s234_s12 = scalar_select %p233_p13, %s673_s22, 1  ;;  %512 = vset.pattern.permute.xlu1 %v618_v2  ;;  %514 = vset.pattern.permute.xlu0 %v618_v2  ;;  %298 = vst.msk [vmem:[#allocation3] sm:$0xff] %vm297_vm2, %v619_v9  ;;  %vm305_vm3 = vcmask 15360   ;;  %v250_v15 = vld [vmem:[#allocation4 + $0x8] sm:$0xf]  ;;  %vm303_vm4 = vcmask 130080  }
  0x19   : > { %258 = vperm.xlu1 %512, %v254_v1   ;;  %513 = vset.pattern.permute.xlu2 %v618_v2  ;;  %s620_s30 = smov 4   ;;  %s621_s6 = smov 2   ;;  %306 = vst.msk [vmem:[#allocation3 + $0x8] sm:$0xff] %vm305_vm3, %v619_v9  ;;  %v317_v17 = vld [vmem:[%s770_s4] sm:$0xf]  ;;  %vm310_vm5 = vcmask 130064  }
  0x1a   : > { %s443_s13 = sshll.u32 %s234_s12, 3  ;;  %v255_v18 = vld [vmem:[%s768_s2 + $0x8] sm:$0xf]  ;;  %v313_v21 = vld [vmem:[%s769_s3] sm:$0xf]  ;;  %s448_s15 = sshll.u32 %s673_s22, 2 }
  0x1b   : > { %s236_s16 = scalar_lea.vmem %s766_s0, %s443_s13  ;;  %s230_s13 = sand.u32 1, %s603_s19   ;;  %vm347_vm6 = vcmask 125952  }
  0x1c   : > { %v237_v0 = vld [vmem:[%s236_s16] sm:$0xff]  ;;  %s442_s14 = sshll.u32 %s230_s13, 2  ;;  %s350_s22 = scalar_lea.sflag [#allocation6], %s230_s13 }
  0x1d   : > { %245 = vrot.lane.b32.xlu0 %v237_v0, %s616_s17  ;;  %239 = vst.msk [vmem:[#allocation2] sm:$0xff] %vm238_vm0, %v237_v0  ;;  %s232_s25 = scalar_lea.vmem [#allocation7], %s442_s14  ;;  %s565_s10 = scalar_lea.hbm %s771_s5, 8 }
  0x1e   : > { %s362_s26 = sshll.u32 %s232_s25, 4  ;;  %s363_s26 = int_to_ptr.vmem [resolvable:$true] %s362_s26 }
  0x24   : > { %v251_v7 = vld [vmem:[#allocation2] sm:$0xff] }
  0x25   : > { %241 = vrot.lane.b32.xlu0 %v237_v0, %s617_s23  ;;  %s360_s23 = scalar_lea.hbm %s771_s5, %s448_s15 }
  0x2d   : > { %320 = vperm.xlu0 %514, %v317_v17  }
  0x8b   : > { %v259_v10 = vpop.permute.xlu1 %258 }
  0x8f   : > { %v246_v3 = vpop.permute.xlu0 %245 }
  0x90   : > { %248 = vst.msk [vmem:[#allocation2 + $0x10] sm:$0xff] %vm238_vm0, %v246_v3 }
  0x97   : > { %v242_v4 = vpop.permute.xlu0 %241  ;;  %v253_v5 = vld [vmem:[#allocation2 + $0x10] sm:$0xff] }
  0x98   : > { %244 = vst.msk [vmem:[#allocation2 + $0x8] sm:$0xff] %vm238_vm0, %v242_v4  ;;  %286 = vmatpush.msra.mxu0 %v253_v5  ;;  %451 = vmatpush.msra.mxu2 %v253_v5 }
  0x9f   : > { %v252_v6 = vld [vmem:[#allocation2 + $0x8] sm:$0xff]  ;;  %v321_v25 = vpop.permute.xlu0 %320 }
  0xa0   : > { %287 = vmatpush.msra.mxu0 %v252_v6  ;;  %452 = vmatpush.msra.mxu2 %v252_v6 }
  0xa2   : > { %288 = vmatpush.msra.mxu0 %v251_v7  ;;  %453 = vmatpush.msra.mxu2 %v251_v7 }
  0xa3   : > { %444 = vmatmul.msk.f32.vlgmr.msra.gmra.mxu0 %vm266_vm1, %v249_v8  ;;  %445 = vmatmul.msk.f32.vlgmr.msra.gmra.mxu2 %vm266_vm1, %v250_v15 }
 0x120   : > { %v290_v11 = vpop.f32.mrf.mxu0 }
 0x121   : > { %v291_v12 = vadd.f32 %v290_v11, %v259_v10 }
 0x123   : > { %v296_v13 = vmax.f32 %v291_v12, 0.0 }
 0x125   : > { %312 = vst.msk [vmem:[#allocation3 + $0x10] sm:$0xff] %vm238_vm0, %v296_v13  ;;  %300 = vrot.lane.b32.xlu2 %v296_v13, %s620_s30  ;;  %307 = vrot.lane.b32.xlu1 %v296_v13, %s621_s6  ;;  %s364_s30 = sshll.u32 %s360_s23, 4  ;;  %s365_s30 = int_to_ptr.hbm [resolvable:$true] %s364_s30 }
 0x126   : > { %v293_v23 = vpop.f32.mrf.mxu2  ;;  %s559_s6 = sshra.s32 %s365_s30, 4  ;;  %s560_s6 = int_to_ptr.hbm [resolvable:$true] %s559_s6 }
 0x127   : > { %s561_s7 = scalar_lea.hbm %s560_s6, 4  ;;  %p566_p3 = scmp.lt.s32.totalorder %s560_s6, %s771_s5 }
 0x128   : > { %p562_p0 = scmp.ne.s32.totalorder %s560_s6, %s561_s7  ;;  %p567_p4 = scmp.lt.s32.totalorder %s565_s10, %s561_s7 }
 0x12a   : > { %p563_p1 = pnand %p562_p0, %p690_p5  ;;  %p568_p7 = por %p567_p4, %p566_p3 }
 0x12c   : > { %v316_v14 = vld [vmem:[#allocation3 + $0x10] sm:$0xff]  ;;  %p564_p2 = pneg %p563_p1 }
 0x12d   : > { %339 = vmatpush.msra.mxu1 %v316_v14  ;;  %263 = vperm.xlu2 %513, %v255_v18  }
 0x12e   : > { %p569_p8 = pnand %p568_p7, %p564_p2 }
 0x17f   : > { %v301_v16 = vpop.permute.xlu2 %300 }
 0x180   : > { %304 = vst.msk [vmem:[#allocation3] sm:$0xff] %vm303_vm4, %v301_v16 }
 0x187   : > { %v314_v22 = vld [vmem:[#allocation3] sm:$0xff]  ;;  %v264_v24 = vpop.permute.xlu2 %263 }
 0x188   : > { %v294_v26 = vadd.f32 %v293_v23, %v264_v24 }
 0x197   : > { %v308_v19 = vpop.permute.xlu1 %307 }
 0x198   : > { %311 = vst.msk [vmem:[#allocation3 + $0x8] sm:$0xff] %vm310_vm5, %v308_v19 }
 0x19f   : > { %v315_v20 = vld [vmem:[#allocation3 + $0x8] sm:$0xff] }
 0x1a0   : > { %340 = vmatpush.msra.mxu1 %v315_v20 }
 0x1a2   : > { %341 = vmatpush.msra.mxu1 %v314_v22 }
 0x1a3   : > { %446 = vmatmul.msk.f32.vlgmr.msra.gmra.mxu1 %vm266_vm1, %v313_v21 }
 0x220   : > { %v343_v27 = vpop.f32.mrf.mxu1 }
 0x221   : > { %v344_v28 = vadd.f32 %v343_v27, %v321_v25 }
 0x223   : > { %v346_v29 = vadd.f32 %v344_v28, %v294_v26 }
 0x225   : > { %348 = vst.msk [vmem:[%s232_s25] sm:$0xf] %vm347_vm6, %v346_v29 }
 0x226   : > { %572 = shalt.err (!%p569_p8)
}
 0x227   : > { %458 = dma.vmem_to_hbm [thread:$0]  (%p690_p5), %s363_s26, 64, %s365_s30, %s350_s22  }
 0x228 PF: > { %p470_p9 = scmp.ge.s32.totalorder %s611_s21, 2  ;;  %s376_s13 = sand.u32 1, %s599_s18  }
 0x229   : > { %s377_s14 = scalar_lea.sflag [#allocation6], %s376_s13 }
 0x22a   : > { %p465_p10 = pnand %p470_p9, %p694_p6 }
 0x22c   : > { %p466_p11 = pneg %p465_p10 }
 0x22e   : > { %594 = dma.done.wait (%p466_p11), %s377_s14, 64  }
 0x22f   : > { %596 = vsyncadd (%p466_p11), %s377_s14, 4294967232  ;;  %p16_p12 = scmp.ge.s32.totalorder %s677_s24, 4   ;;  %s774_s18 = smov %s603_s19 }
 0x230   : > { %s775_s19 = smov %s607_s20  ;;  %s776_s20 = smov %s688_s27 }
 0x231   : > { %s777_s21 = smov %s677_s24  ;;  %18 = sbr.rel (!%p16_p12) target bundleno = 4 (0x4), region = 80 }
 0x236   :  { %383 = vsyncpa [#allocation5], 1 }
 0x237   :  { %385 = vsyncpa [#allocation5 + $0x1], 1 }
 0x238   :  { %386 = vsyncpa [#allocation6], 1 }
 0x239   :  { %388 = vsyncpa [#allocation6 + $0x1], 1 }

</bundles_post_ra>
